<compile_context>
chip_gen: v6e
topology: v6e:2x2x1
jax: 0.10.0
libtpu: 0.0.40
codegen_flags: <defaults>
</compile_context>

<pallas_src>
import functools

import jax
import jax.numpy as jnp
from jax.experimental import pallas as pl
from jax.experimental.pallas import tpu as pltpu


# ---------------------------------------------------------------------------
# Kernels
# ---------------------------------------------------------------------------
def _finish(x, state, sel_pre, bias_ref, wcf_ref, out_ref, state_ref):
    """Shared epilogue: SiLU gate, feedback add, fused C*fc2 matmul, stores."""
    selective = sel_pre * jax.nn.sigmoid(sel_pre) * x          # SiLU(sel_pre) * x, f32
    adjusted = selective + state * bias_ref[1:2, :]            # feedback_weight row
    out = (jnp.dot(adjusted.astype(wcf_ref.dtype), wcf_ref[...],
                   preferred_element_type=jnp.float32)
           + bias_ref[2:3, :])                                 # b_fc2 row
    state_ref[...] = state.astype(state_ref.dtype)
    out_ref[...] = out.astype(out_ref.dtype)


def _conba_kernel_general(prev_ref, x_ref, wa_ref, wbsel_ref, wcf_ref, bias_ref,
                          out_ref, state_ref, *, d):
    """previous_state provided.

    prev_ref : (tb, D)  previous state          (f32)
    x_ref    : (tb, D)  input                   (f32)
    wa_ref   : (D, D)   A^T                     (bf16)
    wbsel_ref: (D, 2D)  [B^T | W_sel^T]         (bf16)
    wcf_ref  : (D, D)   C^T @ W_fc2^T           (bf16)
    bias_ref : (8, D)   rows: b_sel, feedback_weight, b_fc2  (f32)
    """
    cdt = wbsel_ref.dtype
    x = x_ref[...]
    bs = jnp.dot(x.astype(cdt), wbsel_ref[...],
                 preferred_element_type=jnp.float32)            # (tb, 2D) = [xB^T | sel]
    state = (jnp.dot(prev_ref[...].astype(cdt), wa_ref[...],
                     preferred_element_type=jnp.float32)
             + bs[:, :d])                                       # lane-aligned split
    sel_pre = bs[:, d:] + bias_ref[0:1, :]
    _finish(x, state, sel_pre, bias_ref, wcf_ref, out_ref, state_ref)


def _conba_kernel_nostate(x_ref, wbsel_ref, wcf_ref, bias_ref,
                          out_ref, state_ref, *, d):
    """previous_state is None => prev == 0 => state = x @ B^T (A matmul dropped)."""
    cdt = wbsel_ref.dtype
    x = x_ref[...]
    bs = jnp.dot(x.astype(cdt), wbsel_ref[...],
                 preferred_element_type=jnp.float32)            # (tb, 2D)
    state = bs[:, :d]
    sel_pre = bs[:, d:] + bias_ref[0:1, :]
    _finish(x, state, sel_pre, bias_ref, wcf_ref, out_ref, state_ref)


# ---------------------------------------------------------------------------
# Parameters
# ---------------------------------------------------------------------------
def init_conba_params(key, input_dim, dtype=jnp.float32):
    """PyTorch-style init: Linear weights/biases ~ U(-1/sqrt(D), 1/sqrt(D));
    feedback_weight = ones."""
    D = input_dim
    bound = 1.0 / jnp.sqrt(jnp.asarray(D, dtype))
    ks = jax.random.split(key, 7)
    u = lambda k, shape: jax.random.uniform(k, shape, dtype, -bound, bound)
    return {
        "w_sel": u(ks[0], (D, D)),         # selective_fc.weight
        "b_sel": u(ks[1], (D,)),           # selective_fc.bias
        "A": u(ks[2], (D, D)),             # A.weight (no bias)
        "B": u(ks[3], (D, D)),             # B.weight (no bias)
        "C": u(ks[4], (D, D)),             # C.weight (no bias)
        "w_fc2": u(ks[5], (D, D)),         # fc2.weight
        "b_fc2": u(ks[6], (D,)),           # fc2.bias
        "feedback_weight": jnp.ones((D,), dtype),
    }


def prepare_conba_params(params, weight_dtype=jnp.bfloat16):
    """One-time host prep (hoisted out of the per-step forward):
    pre-transpose, pre-fuse, and pre-cast weights; pack small vectors."""
    D = params["w_sel"].shape[0]
    w_a_t = params["A"].T                                              # (D, D)
    w_bsel = jnp.concatenate([params["B"].T, params["w_sel"].T], 1)    # (D, 2D)
    w_cf = params["C"].T @ params["w_fc2"].T                           # fused in f32
    bias = (jnp.zeros((8, D), jnp.float32)                             # one aligned slab
            .at[0].set(params["b_sel"].astype(jnp.float32))
            .at[1].set(params["feedback_weight"].astype(jnp.float32))
            .at[2].set(params["b_fc2"].astype(jnp.float32)))
    return {
        "w_a_t": w_a_t.astype(weight_dtype),
        "w_bsel": w_bsel.astype(weight_dtype),
        "w_cf": w_cf.astype(weight_dtype),
        "bias": bias,
    }


# ---------------------------------------------------------------------------
# Forward wrapper
# ---------------------------------------------------------------------------
def _pick_batch_tile(B, max_tile=256):
    """Full batch in one grid step when it fits a tile; otherwise 256-row tiles
    (native MXU fill on v6e/v7x; multiple of 128 for v5e)."""
    if B <= max_tile:
        return B
    for t in (256, 128, 64, 32, 16, 8):
        if B % t == 0:
            return t
    return B


def conba_forward(x, prep, previous_state=None):
    """Matches ConbaNoControl.forward: returns (output (B, D), state (B, D))."""
    if x.ndim > 2:
        x = x.reshape(x.shape[0], -1)
    B, D = x.shape
    tb = _pick_batch_tile(B)
    grid = (B // tb,)
    has_prev = previous_state is not None

    wbytes = jnp.dtype(prep["w_bsel"].dtype).itemsize
    abytes = jnp.dtype(x.dtype).itemsize

    row_spec = pl.BlockSpec((tb, D), lambda i: (i, 0))
    wfull = lambda shape: pl.BlockSpec(shape, lambda i: (0, 0))   # weights stay VMEM-resident

    out_shape = (jax.ShapeDtypeStruct((B, D), x.dtype),
                 jax.ShapeDtypeStruct((B, D), x.dtype))
    out_specs = (row_spec, row_spec)

    # Advisory cost hint (3 or 4 D x D matmul-equivalents per row, 1 sigmoid per elem).
    n_k = 4 if has_prev else 3
    weight_bytes = (D * 2 * D + (D * D if has_prev else 0) + D * D) * wbytes + 8 * D * 4
    cost = pl.CostEstimate(
        flops=2 * B * D * D * n_k,
        transcendentals=B * D,
        bytes_accessed=weight_bytes + (n_k * B * D) * abytes)

    # VMEM budget: double-buffered weights + double-buffered row tiles + headroom.
    n_row_tiles = (3 if has_prev else 2) + 2            # inputs + (out, state)
    needed = 2 * weight_bytes + 2 * n_row_tiles * tb * D * abytes + (8 << 20)
    vmem_limit = int(min(128 << 20, max(32 << 20, needed)))

    cp = pltpu.CompilerParams(
        dimension_semantics=(("parallel",) if grid[0] > 1 else ("arbitrary",)),
        vmem_limit_bytes=vmem_limit)

    if not has_prev:
        out, state = pl.pallas_call(
            functools.partial(_conba_kernel_nostate, d=D),
            out_shape=out_shape,
            grid=grid,
            in_specs=[row_spec,            # x
                      wfull((D, 2 * D)),   # [B^T | W_sel^T]
                      wfull((D, D)),       # C^T @ W_fc2^T
                      wfull((8, D))],      # packed biases / feedback_weight
            out_specs=out_specs,
            compiler_params=cp,
            cost_estimate=cost,
        )(x, prep["w_bsel"], prep["w_cf"], prep["bias"])
    else:
        prev = previous_state.reshape(B, D).astype(x.dtype)
        out, state = pl.pallas_call(
            functools.partial(_conba_kernel_general, d=D),
            out_shape=out_shape,
            grid=grid,
            in_specs=[row_spec,            # prev
                      row_spec,            # x
                      wfull((D, D)),       # A^T
                      wfull((D, 2 * D)),   # [B^T | W_sel^T]
                      wfull((D, D)),       # C^T @ W_fc2^T
                      wfull((8, D))],      # packed biases / feedback_weight
            out_specs=out_specs,
            compiler_params=cp,
            cost_estimate=cost,
        )(prev, x, prep["w_a_t"], prep["w_bsel"], prep["w_cf"], prep["bias"])

    return out, state


# ---------------------------------------------------------------------------
# Pure-JAX reference (direct f32 transcription of the PyTorch forward)
# ---------------------------------------------------------------------------
def _reference_forward(x, params, previous_state=None):
    if x.ndim > 2:
        x = x.reshape(x.shape[0], -1)
    prev = jnp.zeros_like(x) if previous_state is None else previous_state.reshape(x.shape)
    state = prev @ params["A"].T + x @ params["B"].T
    sel_pre = x @ params["w_sel"].T + params["b_sel"]
    selective = (sel_pre * jax.nn.sigmoid(sel_pre)) * x
    adjusted = selective + state * params["feedback_weight"]
    out = adjusted @ params["C"].T
    out = out @ params["w_fc2"].T + params["b_fc2"]
    return out, state


if __name__ == "__main__":
    key = jax.random.PRNGKey(0)
    k_x, k_p = jax.random.split(key)

    # Lane/sublane-dense small shapes: B=16 (>=8 f32 sublanes), x (16,4,8,8) -> D=256.
    B, D = 16, 256
    x = jax.random.normal(k_x, (B, 4, 8, 8), dtype=jnp.float32)
    params = init_conba_params(k_p, D)
    prep = prepare_conba_params(params)   # one-time weight prep (bf16 cast, fusions)

    # bf16 weights (f32 accumulate) -> loosened tolerance vs. the pure-f32 reference.
    ATOL = RTOL = 5e-2

    # Step 1: previous_state=None (specialized kernel: A weight and matmul skipped).
    out1, state1 = conba_forward(x, prep, previous_state=None)
    out1 = jax.block_until_ready(out1)
    state1 = jax.block_until_ready(state1)

    ref_out1, ref_state1 = _reference_forward(x, params, previous_state=None)
    assert out1.shape == (B, D) and state1.shape == (B, D)
    assert jnp.allclose(out1, ref_out1, atol=ATOL, rtol=RTOL)
    assert jnp.allclose(state1, ref_state1, atol=ATOL, rtol=RTOL)

    # Step 2: feed the produced state back in (general kernel with A^T matmul).
    out2, state2 = conba_forward(x, prep, previous_state=state1)
    out2 = jax.block_until_ready(out2)
    state2 = jax.block_until_ready(state2)

    ref_out2, ref_state2 = _reference_forward(x, params, previous_state=ref_state1)
    assert jnp.allclose(out2, ref_out2, atol=ATOL, rtol=RTOL)
    assert jnp.allclose(state2, ref_state2, atol=ATOL, rtol=RTOL)

    print("KERNEL_OK")
</pallas_src>

<mosaic_0001>
module attributes {stable_mosaic.version = 11 : i64} {
  func.func @_conba_kernel_nostate(%arg0: i32, %arg1: memref<16x256xf32, #tpu.memory_space<vmem>>, %arg2: memref<256x512xbf16, #tpu.memory_space<vmem>>, %arg3: memref<256x256xbf16, #tpu.memory_space<vmem>>, %arg4: memref<8x256xf32, #tpu.memory_space<vmem>>, %arg5: memref<16x256xf32, #tpu.memory_space<vmem>>, %arg6: memref<16x256xf32, #tpu.memory_space<vmem>>) attributes {dimension_semantics = [#tpu.dimension_semantics<arbitrary>], iteration_bounds = array<i64: 1>, scalar_prefetch = 0 : i64, scratch_operands = 0 : i64, tpu.core_type = #tpu.core_type<tc>, window_params = [{transform_indices = @transform_0, window_bounds = array<i64: 16, 256>}, {pipeline_mode = #tpu.pipeline_mode<synchronous>, transform_indices = @transform_1, window_bounds = array<i64: 256, 512>}, {pipeline_mode = #tpu.pipeline_mode<synchronous>, transform_indices = @transform_2, window_bounds = array<i64: 256, 256>}, {pipeline_mode = #tpu.pipeline_mode<synchronous>, transform_indices = @transform_3, window_bounds = array<i64: 8, 256>}, {transform_indices = @transform_4, window_bounds = array<i64: 16, 256>}, {transform_indices = @transform_5, window_bounds = array<i64: 16, 256>}]} {
    %c0 = arith.constant 0 : index
    %c0_0 = arith.constant 0 : index
    %0 = vector.load %arg1[%c0, %c0_0] : memref<16x256xf32, #tpu.memory_space<vmem>>, vector<16x256xf32>
    %1 = arith.truncf %0 : vector<16x256xf32> to vector<16x256xbf16>
    %c0_1 = arith.constant 0 : index
    %c0_2 = arith.constant 0 : index
    %2 = vector.load %arg2[%c0_1, %c0_2] : memref<256x512xbf16, #tpu.memory_space<vmem>>, vector<256x512xbf16>
    %cst = arith.constant dense<0.000000e+00> : vector<16x512xf32>
    %3 = tpu.matmul %1, %2, %cst {dimension_numbers = #tpu.dot_dimension_numbers<[1], [0], [0], [1], [0, 0, 1, 1], [], []>} : vector<16x256xbf16>, vector<256x512xbf16>, vector<16x512xf32> -> vector<16x512xf32>
    %4 = vector.extract_strided_slice %3 {offsets = [0, 0], sizes = [16, 256], strides = [1, 1]} : vector<16x512xf32> to vector<16x256xf32>
    %5 = vector.extract_strided_slice %3 {offsets = [0, 256], sizes = [16, 256], strides = [1, 1]} : vector<16x512xf32> to vector<16x256xf32>
    %c0_3 = arith.constant 0 : index
    %c0_4 = arith.constant 0 : index
    %6 = vector.load %arg4[%c0_3, %c0_4] : memref<8x256xf32, #tpu.memory_space<vmem>>, vector<1x256xf32>
    %7 = vector.broadcast %6 : vector<1x256xf32> to vector<16x256xf32>
    %8 = arith.addf %5, %7 : vector<16x256xf32>
    %9 = arith.negf %8 : vector<16x256xf32>
    %10 = math.exp %9 : vector<16x256xf32>
    %cst_5 = arith.constant 1.000000e+00 : f32
    %11 = vector.broadcast %cst_5 : f32 to vector<16x256xf32>
    %12 = arith.addf %11, %10 : vector<16x256xf32>
    %13 = arith.divf %11, %12 : vector<16x256xf32>
    %14 = arith.mulf %8, %13 : vector<16x256xf32>
    %15 = arith.mulf %14, %0 : vector<16x256xf32>
    %c1 = arith.constant 1 : index
    %c0_6 = arith.constant 0 : index
    %16 = vector.load %arg4[%c1, %c0_6] : memref<8x256xf32, #tpu.memory_space<vmem>>, vector<1x256xf32>
    %17 = vector.broadcast %16 : vector<1x256xf32> to vector<16x256xf32>
    %18 = arith.mulf %4, %17 : vector<16x256xf32>
    %19 = arith.addf %15, %18 : vector<16x256xf32>
    %20 = arith.truncf %19 : vector<16x256xf32> to vector<16x256xbf16>
    %c0_7 = arith.constant 0 : index
    %c0_8 = arith.constant 0 : index
    %21 = vector.load %arg3[%c0_7, %c0_8] : memref<256x256xbf16, #tpu.memory_space<vmem>>, vector<256x256xbf16>
    %cst_9 = arith.constant dense<0.000000e+00> : vector<16x256xf32>
    %22 = tpu.matmul %20, %21, %cst_9 {dimension_numbers = #tpu.dot_dimension_numbers<[1], [0], [0], [1], [0, 0, 1, 1], [], []>} : vector<16x256xbf16>, vector<256x256xbf16>, vector<16x256xf32> -> vector<16x256xf32>
    %c2 = arith.constant 2 : index
    %c0_10 = arith.constant 0 : index
    %23 = vector.load %arg4[%c2, %c0_10] : memref<8x256xf32, #tpu.memory_space<vmem>>, vector<1x256xf32>
    %24 = vector.broadcast %23 : vector<1x256xf32> to vector<16x256xf32>
    %25 = arith.addf %22, %24 : vector<16x256xf32>
    %c0_11 = arith.constant 0 : index
    %c0_12 = arith.constant 0 : index
    %26 = vector.load %arg6[%c0_11, %c0_12] : memref<16x256xf32, #tpu.memory_space<vmem>>, vector<16x256xf32>
    tpu.vector_store %arg6[%c0_11, %c0_12], %4 {strides = array<i32>} : memref<16x256xf32, #tpu.memory_space<vmem>>, vector<16x256xf32>,
    %c0_13 = arith.constant 0 : index
    %c0_14 = arith.constant 0 : index
    %27 = vector.load %arg5[%c0_13, %c0_14] : memref<16x256xf32, #tpu.memory_space<vmem>>, vector<16x256xf32>
    tpu.vector_store %arg5[%c0_13, %c0_14], %25 {strides = array<i32>} : memref<16x256xf32, #tpu.memory_space<vmem>>, vector<16x256xf32>,
    return
  }
  func.func @transform_0(%arg0: i32) -> (i32, i32) {
    %c0_i32 = arith.constant 0 : i32
    %c0_i32_0 = arith.constant 0 : i32
    return %arg0, %c0_i32 : i32, i32
  }
  func.func @transform_1(%arg0: i32) -> (i32, i32) {
    %c0_i32 = arith.constant 0 : i32
    %c0_i32_0 = arith.constant 0 : i32
    %c0_i32_1 = arith.constant 0 : i32
    return %c0_i32, %c0_i32_0 : i32, i32
  }
  func.func @transform_2(%arg0: i32) -> (i32, i32) {
    %c0_i32 = arith.constant 0 : i32
    %c0_i32_0 = arith.constant 0 : i32
    %c0_i32_1 = arith.constant 0 : i32
    return %c0_i32, %c0_i32_0 : i32, i32
  }
  func.func @transform_3(%arg0: i32) -> (i32, i32) {
    %c0_i32 = arith.constant 0 : i32
    %c0_i32_0 = arith.constant 0 : i32
    %c0_i32_1 = arith.constant 0 : i32
    return %c0_i32, %c0_i32_0 : i32, i32
  }
  func.func @transform_4(%arg0: i32) -> (i32, i32) {
    %c0_i32 = arith.constant 0 : i32
    %c0_i32_0 = arith.constant 0 : i32
    return %arg0, %c0_i32 : i32, i32
  }
  func.func @transform_5(%arg0: i32) -> (i32, i32) {
    %c0_i32 = arith.constant 0 : i32
    %c0_i32_0 = arith.constant 0 : i32
    return %arg0, %c0_i32 : i32, i32
  }
}

</mosaic_0001>

<bundles_post_ra>
// kernel: tpu_custom_call.1
= control target key start
LH: loop header
LB: loop body
LE: loop exit
PB: predicated region body
PF: predicated region fallthrough
CT: control target
= control target key end

     0   :  { %11 = vsyncpa [#allocation3], 0  ;;  %s1408_s0 = inlined_call_operand.hbm [shape: f32[16,256], index: 0, kind: input, shape index: {}]   ;;  %s1409_s1 = inlined_call_operand.hbm [shape: bf16[256,512], index: 1, kind: input, shape index: {}]   ;;  %s1410_s2 = inlined_call_operand.hbm [shape: bf16[256,256], index: 2, kind: input, shape index: {}]   ;;  %s1411_s3 = inlined_call_operand.hbm [shape: f32[8,256], index: 3, kind: input, shape index: {}]   ;;  %s1412_s4 = inlined_call_operand.hbm [shape: f32[16,256], index: 4, kind: output, shape index: {0}]   ;;  %s1413_s5 = inlined_call_operand.hbm [shape: f32[16,256], index: 5, kind: output, shape index: {1}]  }
   0x1   :  { %12 = vsyncpa [#allocation6], 0 }
   0x2   :  { %13 = vsyncpa [#allocation9], 0 }
   0x3   :  { %14 = vsyncpa [#allocation4], 0 }
   0x4   :  { %15 = vsyncpa [#allocation12], 0  ;;  %s1312_s18 = smov [#allocation5]   ;;  %s1313_s20 = smov [#allocation2]  }
   0x5   :  { %s33_s19 = sshll.u32 %s1312_s18, 4  ;;  %s21_s21 = sshll.u32 %s1313_s20, 4  ;;  %s34_s19 = int_to_ptr.vmem [resolvable:$true] %s33_s19  ;;  %s22_s21 = int_to_ptr.vmem [resolvable:$true] %s21_s21 }
   0x6   :  { %s1190_s22 = scalar_lea.vmem %s34_s19, 8192  ;;  %p1195_p1 = scmp.lt.s32.totalorder %s34_s19, %s34_s19 }
   0x7   :  { %p1191_p0 = scmp.ne.s32.totalorder %s34_s19, %s1190_s22  ;;  %p1196_p2 = scmp.lt.s32.totalorder %s1190_s22, %s1190_s22 }
   0x9   :  { %p1197_p3 = por %p1196_p2, %p1195_p1 }
   0xb   :  { %p1198_p4 = pnand %p1197_p3, %p1191_p0 }
   0xd   :  { %1201 = shalt.err (!%p1198_p4)
}
   0xe   :  { %s1314_s23 = smov 256   ;;  %s1315_s24 = smov 16  }
   0xf   :  { %39 = dma.hbm_to_vmem [thread:$0]  %s1409_s1, 8192, %s34_s19, [#allocation6], %s1314_s23, %s1314_s23, %s1315_s24  }
  0x10   :  { %s1210_s27 = scalar_lea.vmem %s22_s21, 512  ;;  %p1215_p6 = scmp.lt.s32.totalorder %s22_s21, %s22_s21 }
  0x11   :  { %p1211_p5 = scmp.ne.s32.totalorder %s22_s21, %s1210_s27  ;;  %p1216_p7 = scmp.lt.s32.totalorder %s1210_s27, %s1210_s27 }
  0x13   :  { %p1217_p8 = por %p1216_p7, %p1215_p6 }
  0x15   :  { %p1218_p9 = pnand %p1217_p8, %p1211_p5 }
  0x17   :  { %1221 = shalt.err (!%p1218_p9)
}
  0x18   :  { %27 = dma.hbm_to_vmem [thread:$0]  %s1408_s0, 512, %s22_s21, [#allocation3], %s1314_s23, %s1314_s23, %s1315_s24  }
  0x19   :  { %s1316_s30 = smov [#allocation7]  }
  0x1a   :  { %s45_s6 = sshll.u32 %s1316_s30, 4  ;;  %s46_s6 = int_to_ptr.vmem [resolvable:$true] %s45_s6 }
  0x1b   :  { %s1230_s7 = scalar_lea.vmem %s46_s6, 4096  ;;  %p1235_p11 = scmp.lt.s32.totalorder %s46_s6, %s46_s6 }
  0x1c   :  { %p1231_p10 = scmp.ne.s32.totalorder %s46_s6, %s1230_s7  ;;  %p1236_p12 = scmp.lt.s32.totalorder %s1230_s7, %s1230_s7 }
  0x1e   :  { %p1237_p13 = por %p1236_p12, %p1235_p11 }
  0x20   :  { %p1238_p0 = pnand %p1237_p13, %p1231_p10 }
  0x22   :  { %1241 = shalt.err (!%p1238_p0)
}
  0x23   :  { %s1317_s1 = smov 128   ;;  %s1318_s8 = smov 8  }
  0x24   :  { %51 = dma.hbm_to_vmem [thread:$0]  %s1410_s2, 4096, %s46_s6, [#allocation6], %s1317_s1, %s1317_s1, %s1318_s8  }
  0x25   :  { %s1319_s11 = smov [#allocation8]  }
  0x26   :  { %s58_s12 = sshll.u32 %s1319_s11, 4  ;;  %s59_s12 = int_to_ptr.vmem [resolvable:$true] %s58_s12 }
  0x27   :  { %s1250_s0 = scalar_lea.vmem %s59_s12, 256  ;;  %p1255_p2 = scmp.lt.s32.totalorder %s59_s12, %s59_s12 }
  0x28   :  { %p1251_p1 = scmp.ne.s32.totalorder %s59_s12, %s1250_s0  ;;  %p1256_p3 = scmp.lt.s32.totalorder %s1250_s0, %s1250_s0 }
  0x2a   :  { %p1257_p4 = por %p1256_p3, %p1255_p2 }
  0x2c   :  { %p1258_p5 = pnand %p1257_p4, %p1251_p1 }
  0x2e   :  { %1261 = shalt.err (!%p1258_p5)
}
  0x2f   :  { %61 = dma.hbm_to_vmem [thread:$0]  %s1411_s3, 256, %s59_s12, [#allocation9]  }
  0x30   :  { %1302 = dma.done.wait [#allocation3], 512  }
  0x31   :  { %1303 = vsyncadd [#allocation3], 4294966784 }
  0x32   :  { %1304 = dma.done.wait [#allocation6], 12288  }
  0x33   :  { %1305 = vsyncadd [#allocation6], 4294955008 }
  0x34   :  { %1306 = dma.done.wait [#allocation9], 256  }
  0x35   :  { %1307 = vsyncadd [#allocation9], 4294967040  ;;  %v1022_v0 = vld [vmem:[#allocation5 + $0xec] ss:$16 sps:$4 sm:$0xff]   ;;  %v1024_v1 = vld [vmem:[#allocation5 + $0xe8] ss:$16 sps:$4 sm:$0xff]  }
  0x36   :  { %507 = vmatprep.subr.bf16.mxu1 %v1022_v0  ;;  %v1025_v2 = vld [vmem:[#allocation5 + $0xcc] ss:$16 sps:$4 sm:$0xff]   ;;  %v1027_v3 = vld [vmem:[#allocation5 + $0xc8] ss:$16 sps:$4 sm:$0xff]   ;;  %v1046_v8 = vld [vmem:[#allocation5 + $0xe4] ss:$16 sps:$4 sm:$0xff]  }
  0x37   :  { %508 = vmatpush1.bf16.msra.mxu1 %v1024_v1  ;;  %v1028_v4 = vld [vmem:[#allocation5 + $0xac] ss:$16 sps:$4 sm:$0xff]   ;;  %v1030_v5 = vld [vmem:[#allocation5 + $0xa8] ss:$16 sps:$4 sm:$0xff]   ;;  %v1048_v9 = vld [vmem:[#allocation5 + $0xe0] ss:$16 sps:$4 sm:$0xff]   ;;  %464 = vmatprep.subr.bf16.mxu0 %v1046_v8 }
  0x38   :  { %509 = vmatprep.subr.bf16.mxu1 %v1025_v2  ;;  %v1031_v6 = vld [vmem:[#allocation5 + $0x8c] ss:$16 sps:$4 sm:$0xff]   ;;  %v1033_v7 = vld [vmem:[#allocation5 + $0x88] ss:$16 sps:$4 sm:$0xff]   ;;  %465 = vmatpush1.bf16.msra.mxu0 %v1048_v9  ;;  %v1052_v11 = vld [vmem:[#allocation5 + $0xc4] ss:$16 sps:$4 sm:$0xff]  }
  0x39   :  { %v1034_v10 = vld [vmem:[#allocation5 + $0x6c] ss:$16 sps:$4 sm:$0xff]   ;;  %v1054_v12 = vld [vmem:[#allocation5 + $0xc0] ss:$16 sps:$4 sm:$0xff]   ;;  %v1036_v13 = vld [vmem:[#allocation5 + $0x68] ss:$16 sps:$4 sm:$0xff]   ;;  %466 = vmatprep.subr.bf16.mxu0 %v1052_v11 }
  0x3a   :  { %v1037_v14 = vld [vmem:[#allocation5 + $0x4c] ss:$16 sps:$4 sm:$0xff]   ;;  %v1058_v15 = vld [vmem:[#allocation5 + $0xa4] ss:$16 sps:$4 sm:$0xff]   ;;  %v1060_v16 = vld [vmem:[#allocation5 + $0xa0] ss:$16 sps:$4 sm:$0xff]  }
  0x3b   :  { %510 = vmatpush1.bf16.msra.mxu1 %v1027_v3  ;;  %v1039_v17 = vld [vmem:[#allocation5 + $0x48] ss:$16 sps:$4 sm:$0xff]   ;;  %v1064_v18 = vld [vmem:[#allocation5 + $0x84] ss:$16 sps:$4 sm:$0xff]   ;;  %v1040_v19 = vld [vmem:[#allocation5 + $0x2c] ss:$16 sps:$4 sm:$0xff]  }
  0x3c   :  { %511 = vmatprep.subr.bf16.mxu1 %v1028_v4  ;;  %467 = vmatpush1.bf16.msra.mxu0 %v1054_v12  ;;  %v1066_v20 = vld [vmem:[#allocation5 + $0x80] ss:$16 sps:$4 sm:$0xff]   ;;  %v1042_v21 = vld [vmem:[#allocation5 + $0x28] ss:$16 sps:$4 sm:$0xff]   ;;  %v1070_v22 = vld [vmem:[#allocation5 + $0x64] ss:$16 sps:$4 sm:$0xff]  }
  0x3d   :  { %468 = vmatprep.subr.bf16.mxu0 %v1058_v15  ;;  %v1043_v23 = vld [vmem:[#allocation5 + $0xc] ss:$16 sps:$4 sm:$0xff]   ;;  %v1072_v24 = vld [vmem:[#allocation5 + $0x60] ss:$16 sps:$4 sm:$0xff]   ;;  %v1045_v25 = vld [vmem:[#allocation5 + $0x8] ss:$16 sps:$4 sm:$0xff]  }
  0x3e   :  { %v1076_v26 = vld [vmem:[#allocation5 + $0x44] ss:$16 sps:$4 sm:$0xff]   ;;  %v1049_v27 = vld [vmem:[#allocation5 + $0x1ec] ss:$16 sps:$4 sm:$0xff]   ;;  %v1078_v28 = vld [vmem:[#allocation5 + $0x40] ss:$16 sps:$4 sm:$0xff]  }
  0x3f   :  { %512 = vmatpush1.bf16.msra.mxu1 %v1030_v5  ;;  %v1051_v29 = vld [vmem:[#allocation5 + $0x1e8] ss:$16 sps:$4 sm:$0xff]   ;;  %v1082_v30 = vld [vmem:[#allocation5 + $0x24] ss:$16 sps:$4 sm:$0xff]   ;;  %v1055_v31 = vld [vmem:[#allocation5 + $0x1cc] ss:$16 sps:$4 sm:$0xff]  }
  0x40   :  { %513 = vmatprep.subr.bf16.mxu1 %v1031_v6  ;;  %469 = vmatpush1.bf16.msra.mxu0 %v1060_v16  ;;  %v1370_v32 = vld [vmem:[#allocation2 + $0x8] sm:$0xff]  ;;  %v1372_v33 = vld [vmem:[#allocation2 + $0x18] sm:$0xff]  ;;  %v1084_v34 = vld [vmem:[#allocation5 + $0x20] ss:$16 sps:$4 sm:$0xff]   ;;  %s1320_s2 = smov [#allocation11]  }
  0x41   :  { %470 = vmatprep.subr.bf16.mxu0 %v1064_v18  ;;  %v79_v35 = vpack.c.bf16 %v1372_v33, %v1370_v32  ;;  %v1057_v36 = vld [vmem:[#allocation5 + $0x1c8] ss:$16 sps:$4 sm:$0xff]   ;;  %v1088_v37 = vld [vmem:[#allocation5 + $0x4] ss:$16 sps:$4 sm:$0xff]   ;;  %v1061_v38 = vld [vmem:[#allocation5 + $0x1ac] ss:$16 sps:$4 sm:$0xff]  }
  0x42   :  { %v1090_v39 = vld [vmem:[#allocation5] ss:$16 sps:$4 sm:$0xff]   ;;  %v1063_v40 = vld [vmem:[#allocation5 + $0x1a8] ss:$16 sps:$4 sm:$0xff]   ;;  %v1094_v41 = vld [vmem:[#allocation5 + $0x1e4] ss:$16 sps:$4 sm:$0xff]  }
  0x43   :  { %514 = vmatpush1.bf16.msra.mxu1 %v1033_v7  ;;  %539 = vmatprep.mubr.bf16.mxu1 %v79_v35  ;;  %v1067_v42 = vld [vmem:[#allocation5 + $0x18c] ss:$16 sps:$4 sm:$0xff]   ;;  %v1096_v43 = vld [vmem:[#allocation5 + $0x1e0] ss:$16 sps:$4 sm:$0xff]   ;;  %v1069_v44 = vld [vmem:[#allocation5 + $0x188] ss:$16 sps:$4 sm:$0xff]  }
  0x44   :  { %515 = vmatprep.subr.bf16.mxu1 %v1034_v10  ;;  %471 = vmatpush1.bf16.msra.mxu0 %v1066_v20  ;;  %v1097_v45 = vld [vmem:[#allocation5 + $0x1c4] ss:$16 sps:$4 sm:$0xff]   ;;  %v1073_v46 = vld [vmem:[#allocation5 + $0x16c] ss:$16 sps:$4 sm:$0xff]   ;;  %v1075_v47 = vld [vmem:[#allocation5 + $0x168] ss:$16 sps:$4 sm:$0xff]  }
  0x45   :  { %472 = vmatprep.subr.bf16.mxu0 %v1070_v22  ;;  %496 = vmatprep.mubr.bf16.mxu0 %v79_v35  ;;  %v1099_v48 = vld [vmem:[#allocation5 + $0x1c0] ss:$16 sps:$4 sm:$0xff]   ;;  %v1079_v49 = vld [vmem:[#allocation5 + $0x14c] ss:$16 sps:$4 sm:$0xff]   ;;  %v1100_v50 = vld [vmem:[#allocation5 + $0x1a4] ss:$16 sps:$4 sm:$0xff]  }
  0x46   :  { %v1102_v51 = vld [vmem:[#allocation5 + $0x1a0] ss:$16 sps:$4 sm:$0xff]   ;;  %v1081_v52 = vld [vmem:[#allocation5 + $0x148] ss:$16 sps:$4 sm:$0xff]   ;;  %v1103_v53 = vld [vmem:[#allocation5 + $0x184] ss:$16 sps:$4 sm:$0xff]  }
  0x47   :  { %516 = vmatpush1.bf16.msra.mxu1 %v1036_v13  ;;  %v1085_v54 = vld [vmem:[#allocation5 + $0x12c] ss:$16 sps:$4 sm:$0xff]   ;;  %v1105_v55 = vld [vmem:[#allocation5 + $0x180] ss:$16 sps:$4 sm:$0xff]   ;;  %v1087_v56 = vld [vmem:[#allocation5 + $0x128] ss:$16 sps:$4 sm:$0xff]  }
  0x48   :  { %517 = vmatprep.subr.bf16.mxu1 %v1037_v14  ;;  %473 = vmatpush1.bf16.msra.mxu0 %v1072_v24  ;;  %v1106_v57 = vld [vmem:[#allocation5 + $0x164] ss:$16 sps:$4 sm:$0xff]   ;;  %v1091_v58 = vld [vmem:[#allocation5 + $0x10c] ss:$16 sps:$4 sm:$0xff]   ;;  %v1093_v59 = vld [vmem:[#allocation5 + $0x108] ss:$16 sps:$4 sm:$0xff]  }
  0x49   :  { %474 = vmatprep.subr.bf16.mxu0 %v1076_v26  ;;  %v1108_v60 = vld [vmem:[#allocation5 + $0x160] ss:$16 sps:$4 sm:$0xff]   ;;  %v1109_v63 = vld [vmem:[#allocation5 + $0x144] ss:$16 sps:$4 sm:$0xff]   ;;  %s894_s3 = sshll.u32 %s1320_s2, 4  ;;  %s895_s3 = int_to_ptr.vmem [resolvable:$true] %s894_s3 }
  0x4a   :  { %v1376_v61 = vld [vmem:[#allocation2] sm:$0xff]  ;;  %v1378_v62 = vld [vmem:[#allocation2 + $0x10] sm:$0xff]  ;;  %s1262_s15 = scalar_lea.vmem %s895_s3, 512  ;;  %p1267_p7 = scmp.lt.s32.totalorder %s895_s3, %s895_s3 }
  0x4b   :  { %518 = vmatpush1.bf16.msra.mxu1 %v1039_v17  ;;  %v78_v0 = vpack.c.bf16 %v1378_v62, %v1376_v61  ;;  %v1111_v1 = vld [vmem:[#allocation5 + $0x140] ss:$16 sps:$4 sm:$0xff]   ;;  %v1112_v2 = vld [vmem:[#allocation5 + $0x124] ss:$16 sps:$4 sm:$0xff]   ;;  %p1263_p6 = scmp.ne.s32.totalorder %s895_s3, %s1262_s15  ;;  %p1268_p8 = scmp.lt.s32.totalorder %s1262_s15, %s1262_s15 }
  0x4c   :  { %519 = vmatprep.subr.bf16.mxu1 %v1040_v19  ;;  %475 = vmatpush1.bf16.msra.mxu0 %v1078_v28  ;;  %v1114_v3 = vld [vmem:[#allocation5 + $0x120] ss:$16 sps:$4 sm:$0xff]   ;;  %v1115_v4 = vld [vmem:[#allocation5 + $0x104] ss:$16 sps:$4 sm:$0xff]  }
  0x4d   :  { %476 = vmatprep.subr.bf16.mxu0 %v1082_v30  ;;  %v1117_v5 = vld [vmem:[#allocation5 + $0x100] ss:$16 sps:$4 sm:$0xff]   ;;  %v1120_v6 = vld [vmem:[#allocation7 + $0x74] ss:$8 sps:$4 sm:$0xff]   ;;  %v1123_v8 = vld [vmem:[#allocation7 + $0x64] ss:$8 sps:$4 sm:$0xff]   ;;  %p1269_p9 = por %p1268_p8, %p1267_p7 }
  0x4e   :  { %v1118_v7 = vld [vmem:[#allocation7 + $0x70] ss:$8 sps:$4 sm:$0xff]   ;;  %v1121_v9 = vld [vmem:[#allocation7 + $0x60] ss:$8 sps:$4 sm:$0xff]   ;;  %v1126_v10 = vld [vmem:[#allocation7 + $0x54] ss:$8 sps:$4 sm:$0xff]  }
  0x4f   :  { %520 = vmatpush1.bf16.msra.mxu1 %v1042_v21  ;;  %v1124_v11 = vld [vmem:[#allocation7 + $0x50] ss:$8 sps:$4 sm:$0xff]   ;;  %v1129_v12 = vld [vmem:[#allocation7 + $0x44] ss:$8 sps:$4 sm:$0xff]   ;;  %v1127_v13 = vld [vmem:[#allocation7 + $0x40] ss:$8 sps:$4 sm:$0xff]   ;;  %p1270_p10 = pnand %p1269_p9, %p1263_p6 }
  0x50   :  { %521 = vmatprep.subr.bf16.mxu1 %v1043_v23  ;;  %477 = vmatpush1.bf16.msra.mxu0 %v1084_v34  ;;  %v1132_v14 = vld [vmem:[#allocation7 + $0x34] ss:$8 sps:$4 sm:$0xff]   ;;  %v1130_v15 = vld [vmem:[#allocation7 + $0x30] ss:$8 sps:$4 sm:$0xff]   ;;  %v1135_v16 = vld [vmem:[#allocation7 + $0x24] ss:$8 sps:$4 sm:$0xff]  }
  0x51   :  { %478 = vmatprep.subr.bf16.mxu0 %v1088_v37  ;;  %v1133_v17 = vld [vmem:[#allocation7 + $0x20] ss:$8 sps:$4 sm:$0xff]   ;;  %v1138_v18 = vld [vmem:[#allocation7 + $0x14] ss:$8 sps:$4 sm:$0xff]   ;;  %v1136_v19 = vld [vmem:[#allocation7 + $0x10] ss:$8 sps:$4 sm:$0xff]  }
  0x52   :  { %v1141_v20 = vld [vmem:[#allocation7 + $0x4] ss:$8 sps:$4 sm:$0xff]   ;;  %v1139_v21 = vld [vmem:[#allocation7] ss:$8 sps:$4 sm:$0xff]   ;;  %v1144_v22 = vld [vmem:[#allocation7 + $0xf4] ss:$8 sps:$4 sm:$0xff]  }
  0x53   :  { %522 = vmatpush1.bf16.msra.mxu1 %v1045_v25  ;;  %v1142_v23 = vld [vmem:[#allocation7 + $0xf0] ss:$8 sps:$4 sm:$0xff]   ;;  %v1147_v24 = vld [vmem:[#allocation7 + $0xe4] ss:$8 sps:$4 sm:$0xff]   ;;  %v1145_v25 = vld [vmem:[#allocation7 + $0xe0] ss:$8 sps:$4 sm:$0xff]  }
  0x54   :  { %523 = vmatprep.subr.bf16.mxu1 %v1049_v27  ;;  %479 = vmatpush1.bf16.msra.mxu0 %v1090_v39  ;;  %v1150_v26 = vld [vmem:[#allocation7 + $0xd4] ss:$8 sps:$4 sm:$0xff]   ;;  %v1148_v27 = vld [vmem:[#allocation7 + $0xd0] ss:$8 sps:$4 sm:$0xff]   ;;  %v1153_v28 = vld [vmem:[#allocation7 + $0xc4] ss:$8 sps:$4 sm:$0xff]  }
  0x55   :  { %480 = vmatprep.subr.bf16.mxu0 %v1094_v41  ;;  %v1156_v30 = vld [vmem:[#allocation7 + $0xb4] ss:$8 sps:$4 sm:$0xff]   ;;  %v1159_v34 = vld [vmem:[#allocation7 + $0xa4] ss:$8 sps:$4 sm:$0xff]   ;;  %v1157_v35 = vld [vmem:[#allocation7 + $0xa0] ss:$8 sps:$4 sm:$0xff]  }
  0x56   :  { %v1160_v37 = vld [vmem:[#allocation7 + $0x90] ss:$8 sps:$4 sm:$0xff]   ;;  %v1163_v39 = vld [vmem:[#allocation7 + $0x80] ss:$8 sps:$4 sm:$0xff]  }
  0x57   :  { %524 = vmatpush2.bf16.msra.mxu1 %v1051_v29  ;;  %v1151_v29 = vld [vmem:[#allocation7 + $0xc0] ss:$8 sps:$4 sm:$0xff]  }
  0x58   :  { %525 = vmatprep.subr.bf16.mxu1 %v1055_v31  ;;  %481 = vmatpush2.bf16.msra.mxu0 %v1096_v43  ;;  %v1154_v31 = vld [vmem:[#allocation7 + $0xb0] ss:$8 sps:$4 sm:$0xff]   ;;  %v550_v43 = vld [vmem:[#allocation8] ss:$8 sm:$0x3] }
  0x59   :  { %482 = vmatprep.subr.bf16.mxu0 %v1097_v45 }
  0x5b   :  { %526 = vmatpush2.bf16.msra.mxu1 %v1057_v36  ;;  %v1162_v36 = vld [vmem:[#allocation7 + $0x94] ss:$8 sps:$4 sm:$0xff]  }
  0x5c   :  { %527 = vmatprep.subr.bf16.mxu1 %v1061_v38  ;;  %483 = vmatpush2.bf16.msra.mxu0 %v1099_v48  ;;  %v1165_v38 = vld [vmem:[#allocation7 + $0x84] ss:$8 sps:$4 sm:$0xff]  }
  0x5d   :  { %484 = vmatprep.subr.bf16.mxu0 %v1100_v50 }
  0x5f   :  { %528 = vmatpush2.bf16.msra.mxu1 %v1063_v40  ;;  %v552_v40 = vlaneseq }
  0x60   :  { %529 = vmatprep.subr.bf16.mxu1 %v1067_v42  ;;  %485 = vmatpush2.bf16.msra.mxu0 %v1102_v51 }
  0x61   :  { %486 = vmatprep.subr.bf16.mxu0 %v1103_v53  ;;  %v553_v41 = vshrl.u32 %v552_v40, 7 }
  0x63   :  { %530 = vmatpush2.bf16.msra.mxu1 %v1069_v44  ;;  %v1382_v42 = vsub.s32 0, %v553_v41  ;;  %v1384_v44 = vsub.s32 1, %v553_v41 }
  0x64   :  { %531 = vmatprep.subr.bf16.mxu1 %v1073_v46  ;;  %487 = vmatpush2.bf16.msra.mxu0 %v1105_v55 }
  0x65   :  { %488 = vmatprep.subr.bf16.mxu0 %v1106_v57  ;;  %v555_v45 = vrot.slane %v550_v43, %v1382_v42  ;;  %v559_v46 = vrot.slane %v550_v43, %v1384_v44 }
  0x67   :  { %532 = vmatpush2.bf16.msra.mxu1 %v1075_v47 }
  0x68   :  { %533 = vmatprep.subr.bf16.mxu1 %v1079_v49  ;;  %489 = vmatpush2.bf16.msra.mxu0 %v1108_v60 }
  0x69   :  { %490 = vmatprep.subr.bf16.mxu0 %v1109_v63 }
  0x6b   :  { %534 = vmatpush2.bf16.msra.mxu1 %v1081_v52 }
  0x6c   :  { %535 = vmatprep.subr.bf16.mxu1 %v1085_v54  ;;  %491 = vmatpush2.bf16.msra.mxu0 %v1111_v1 }
  0x6d   :  { %492 = vmatprep.subr.bf16.mxu0 %v1112_v2 }
  0x6f   :  { %536 = vmatpush2.bf16.msra.mxu1 %v1087_v56 }
  0x70   :  { %537 = vmatprep.subr.bf16.mxu1 %v1091_v58  ;;  %493 = vmatpush2.bf16.msra.mxu0 %v1114_v3 }
  0x71   :  { %494 = vmatprep.subr.bf16.mxu0 %v1115_v4 }
  0x73   :  { %538 = vmatpush2.bf16.msra.mxu1 %v1093_v59 }
  0x74   :  { %495 = vmatpush2.bf16.msra.mxu0 %v1117_v5 }
  0x75   :  { %826 = vmatprep.subr.bf16.mxu0 %v1120_v6 }
  0x76   :  { %540 = vmatmul.mubr.bf16.vlgmr.msra.gmra.mxu1 %v78_v0 }
  0x77   :  { %497 = vmatmul.mubr.bf16.vlgmr.msra.gmra.mxu0 %v78_v0 }
  0x78   :  { %827 = vmatpush1.bf16.msra.mxu0 %v1118_v7 }
  0x79   :  { %828 = vmatprep.subr.bf16.mxu0 %v1123_v8 }
  0x7c   :  { %829 = vmatpush1.bf16.msra.mxu0 %v1121_v9 }
  0x7d   :  { %830 = vmatprep.subr.bf16.mxu0 %v1126_v10  ;;  %v599_v10 = vld [vmem:[#allocation8 + $0x1] ss:$8 sm:$0x3] }
  0x80   :  { %831 = vmatpush1.bf16.msra.mxu0 %v1124_v11 }
  0x81   :  { %832 = vmatprep.subr.bf16.mxu0 %v1129_v12 }
  0x84   :  { %833 = vmatpush1.bf16.msra.mxu0 %v1127_v13 }
  0x85   :  { %834 = vmatprep.subr.bf16.mxu0 %v1132_v14 }
  0x88   :  { %835 = vmatpush1.bf16.msra.mxu0 %v1130_v15  ;;  %v604_v15 = vrot.slane %v599_v10, %v1382_v42 }
  0x89   :  { %836 = vmatprep.subr.bf16.mxu0 %v1135_v16 }
  0x8c   :  { %837 = vmatpush1.bf16.msra.mxu0 %v1133_v17  ;;  %v608_v17 = vrot.slane %v599_v10, %v1384_v44 }
  0x8d   :  { %838 = vmatprep.subr.bf16.mxu0 %v1138_v18 }
  0x90   :  { %839 = vmatpush1.bf16.msra.mxu0 %v1136_v19 }
  0x91   :  { %840 = vmatprep.subr.bf16.mxu0 %v1141_v20 }
  0x94   :  { %841 = vmatpush1.bf16.msra.mxu0 %v1139_v21 }
  0x95   :  { %842 = vmatprep.subr.bf16.mxu0 %v1144_v22 }
  0x98   :  { %843 = vmatpush2.bf16.msra.mxu0 %v1142_v23 }
  0x99   :  { %844 = vmatprep.subr.bf16.mxu0 %v1147_v24 }
  0x9c   :  { %845 = vmatpush2.bf16.msra.mxu0 %v1145_v25 }
  0x9d   :  { %846 = vmatprep.subr.bf16.mxu0 %v1150_v26 }
  0xa0   :  { %847 = vmatpush2.bf16.msra.mxu0 %v1148_v27 }
  0xa1   :  { %848 = vmatprep.subr.bf16.mxu0 %v1153_v28 }
  0xa4   :  { %849 = vmatpush2.bf16.msra.mxu0 %v1151_v29 }
  0xa5   :  { %850 = vmatprep.subr.bf16.mxu0 %v1156_v30 }
  0xa8   :  { %851 = vmatpush2.bf16.msra.mxu0 %v1154_v31 }
  0xa9   :  { %852 = vmatprep.subr.bf16.mxu0 %v1159_v34 }
  0xac   :  { %853 = vmatpush2.bf16.msra.mxu0 %v1157_v35 }
  0xad   :  { %854 = vmatprep.subr.bf16.mxu0 %v1162_v36 }
  0xb0   :  { %855 = vmatpush2.bf16.msra.mxu0 %v1160_v37 }
  0xb1   :  { %856 = vmatprep.subr.bf16.mxu0 %v1165_v38 }
  0xb4   :  { %857 = vmatpush2.bf16.msra.mxu0 %v1163_v39 }
 0x136   :  { %v541_v47 = vpop.f32.mrf.mxu1 }
 0x137   :  { %v562_v48 = vadd.f32 %v555_v45, %v541_v47  ;;  %v498_v59 = vpop.f32.mrf.mxu0 }
 0x138   :  { %v543_v49 = vpop.f32.mrf.mxu1  ;;  %869 = vst [vmem:[#allocation11] sm:$0xff] %v498_v59  ;;  %v611_v23 = vmul.f32 %v604_v15, %v498_v59 }
 0x139   :  { %v976_v50 = vmul.f32 -1.442695, %v562_v48  ;;  %v563_v51 = vadd.f32 %v559_v46, %v543_v49  ;;  %v500_v60 = vpop.f32.mrf.mxu0 }
 0x13a   :  { %v545_v52 = vpop.f32.mrf.mxu1  ;;  %870 = vst [vmem:[#allocation11 + $0x8] sm:$0xff] %v500_v60  ;;  %v612_v26 = vmul.f32 %v608_v17, %v500_v60 }
 0x13b   :  { %1166 = vpow2.f32 %v976_v50  ;;  %v977_v53 = vmul.f32 -1.442695, %v563_v51  ;;  %v564_v54 = vadd.f32 %v555_v45, %v545_v52  ;;  %v502_v63 = vpop.f32.mrf.mxu0 }
 0x13c   :  { %v547_v55 = vpop.f32.mrf.mxu1  ;;  %871 = vst [vmem:[#allocation11 + $0x10] sm:$0xff] %v502_v63  ;;  %v613_v24 = vmul.f32 %v604_v15, %v502_v63 }
 0x13d   :  { %1168 = vpow2.f32 %v977_v53  ;;  %v978_v56 = vmul.f32 -1.442695, %v564_v54  ;;  %v565_v57 = vadd.f32 %v559_v46, %v547_v55  ;;  %v504_v0 = vpop.f32.mrf.mxu0 }
 0x13e   :  { %872 = vst [vmem:[#allocation11 + $0x18] sm:$0xff] %v504_v0  ;;  %v614_v27 = vmul.f32 %v608_v17, %v504_v0 }
 0x13f   :  { %1170 = vpow2.f32 %v978_v56  ;;  %v979_v58 = vmul.f32 -1.442695, %v565_v57 }
 0x141   :  { %1172 = vpow2.f32 %v979_v58 }
 0x148   :  { %v1167_v1 = vpop.eup %1166 }
 0x149   :  { %v578_v2 = vadd.f32 1.0, %v1167_v1 }
 0x14a   :  { %v1169_v3 = vpop.eup %1168 }
 0x14b   :  { %v579_v4 = vadd.f32 1.0, %v1169_v3  ;;  %1174 = vrcp.f32 %v578_v2 }
 0x14c   :  { %v1171_v5 = vpop.eup %1170 }
 0x14d   :  { %1176 = vrcp.f32 %v579_v4  ;;  %v580_v6 = vadd.f32 1.0, %v1171_v5 }
 0x14e   :  { %v1173_v7 = vpop.eup %1172 }
 0x14f   :  { %1178 = vrcp.f32 %v580_v6  ;;  %v581_v8 = vadd.f32 1.0, %v1173_v7 }
 0x151   :  { %1180 = vrcp.f32 %v581_v8 }
 0x158   :  { %v1175_v9 = vpop.eup %1174 }
 0x159   :  { %v590_v14 = vmul.f32 %v1175_v9, %v562_v48 }
 0x15a   :  { %v1177_v11 = vpop.eup %1176 }
 0x15b   :  { %v591_v12 = vmul.f32 %v1177_v11, %v563_v51  ;;  %v594_v22 = vmul.f32 %v590_v14, %v1376_v61 }
 0x15c   :  { %v1179_v13 = vpop.eup %1178 }
 0x15d   :  { %v592_v16 = vmul.f32 %v1179_v13, %v564_v54  ;;  %v595_v19 = vmul.f32 %v591_v12, %v1370_v32  ;;  %v615_v31 = vadd.f32 %v611_v23, %v594_v22 }
 0x15e   :  { %v1181_v18 = vpop.eup %1180 }
 0x15f   :  { %v596_v20 = vmul.f32 %v592_v16, %v1378_v62  ;;  %v593_v21 = vmul.f32 %v1181_v18, %v565_v57  ;;  %v616_v29 = vadd.f32 %v612_v26, %v595_v19 }
 0x161   :  { %v597_v25 = vmul.f32 %v593_v21, %v1372_v33  ;;  %v617_v28 = vadd.f32 %v613_v24, %v596_v20 }
 0x163   :  { %v618_v30 = vadd.f32 %v614_v27, %v597_v25  ;;  %v619_v35 = vpack.c.bf16 %v617_v28, %v615_v31 }
 0x165   :  { %v620_v34 = vpack.c.bf16 %v618_v30, %v616_v29 }
 0x167   :  { %858 = vmatprep.mubr.bf16.mxu0 %v620_v34 }
 0x168   :  { %859 = vmatmul.mubr.bf16.vlgmr.msra.gmra.mxu0 %v619_v35 }
 0x169   :  { %1273 = shalt.err (!%p1270_p10)
}
 0x16a   :  { %900 = dma.vmem_to_hbm [thread:$0]  %s895_s3, 512, %s1413_s5, [#allocation12], %s1314_s23, %s1314_s23, %s1315_s24   ;;  %v654_v32 = vld [vmem:[#allocation8 + $0x2] ss:$8 sm:$0x3] }
 0x16b   :  { %v659_v33 = vrot.slane %v654_v32, %v1382_v42  ;;  %v663_v61 = vrot.slane %v654_v32, %v1384_v44  ;;  %s1321_s18 = smov [#allocation10]  }
 0x16c   :  { %s882_s19 = sshll.u32 %s1321_s18, 4  ;;  %s883_s19 = int_to_ptr.vmem [resolvable:$true] %s882_s19 }
 0x16d   :  { %s1282_s5 = scalar_lea.vmem %s883_s19, 512  ;;  %p1287_p12 = scmp.lt.s32.totalorder %s883_s19, %s883_s19 }
 0x16e   :  { %p1283_p11 = scmp.ne.s32.totalorder %s883_s19, %s1282_s5  ;;  %p1288_p13 = scmp.lt.s32.totalorder %s1282_s5, %s1282_s5 }
 0x170   :  { %p1289_p0 = por %p1288_p13, %p1287_p12 }
 0x172   :  { %p1290_p1 = pnand %p1289_p0, %p1283_p11 }
 0x228   :  { %v860_v62 = vpop.f32.mrf.mxu0 }
 0x229   :  { %v861_v36 = vadd.f32 %v860_v62, %v659_v33 }
 0x22a   :  { %v862_v37 = vpop.f32.mrf.mxu0 }
 0x22b   :  { %873 = vst [vmem:[#allocation10] sm:$0xff] %v861_v36  ;;  %v863_v38 = vadd.f32 %v862_v37, %v663_v61 }
 0x22c   :  { %v864_v39 = vpop.f32.mrf.mxu0 }
 0x22d   :  { %874 = vst [vmem:[#allocation10 + $0x8] sm:$0xff] %v863_v38  ;;  %v865_v40 = vadd.f32 %v864_v39, %v659_v33 }
 0x22e   :  { %v866_v41 = vpop.f32.mrf.mxu0 }
 0x22f   :  { %875 = vst [vmem:[#allocation10 + $0x10] sm:$0xff] %v865_v40  ;;  %v867_v43 = vadd.f32 %v866_v41, %v663_v61 }
 0x231   :  { %876 = vst [vmem:[#allocation10 + $0x18] sm:$0xff] %v867_v43 }
 0x232   :  { %1293 = shalt.err (!%p1290_p1)
}
 0x233   :  { %888 = dma.vmem_to_hbm [thread:$0]  %s883_s19, 512, %s1412_s4, [#allocation4], %s1314_s23, %s1314_s23, %s1315_s24  }
 0x234   :  { %1308 = dma.done.wait [#allocation4], 512  }
 0x235   :  { %1309 = vsyncadd [#allocation4], 4294966784 }
 0x236   :  { %1310 = dma.done.wait [#allocation12], 512  }
 0x237   :  { %1311 = vsyncadd [#allocation12], 4294966784 }
 0x238   :  { %907 = vsyncpa [#allocation3], 1 }
 0x239   :  { %908 = vsyncpa [#allocation6], 1 }
 0x23a   :  { %909 = vsyncpa [#allocation9], 1 }
 0x23b   :  { %910 = vsyncpa [#allocation4], 1 }
 0x23c   :  { %911 = vsyncpa [#allocation12], 1 }

</bundles_post_ra>
